<compile_context>
chip_gen: v7x
topology: tpu7x:2x2x1
jax: 0.10.0
libtpu: 0.0.40
codegen_flags: <defaults>
</compile_context>

<pallas_src>
import jax
import jax.numpy as jnp
from jax import lax
from jax.experimental import pallas as pl
from jax.experimental.pallas import tpu as pltpu

BN_EPS = 1e-5
LEAKY_SLOPE = 0.2


def _round_up(x, m):
    return (x + m - 1) // m * m


def _cdiv(a, b):
    return (a + b - 1) // b


def _vmem_capacity_bytes():
    try:
        return int(pltpu.get_tpu_info().vmem_capacity_bytes)
    except Exception:
        return 64 * 1024 * 1024            # conservative default (v7x per-TC VMEM)


def _pick_tiling(m, k, out_c):
    """M tile / grid sized against the real per-generation VMEM capacity."""
    m8 = _round_up(m, 8)
    k_lane = _round_up(k, 128)             # lane-padded VMEM footprint of patch tile
    c_lane = _round_up(out_c, 128)         # lane-padded VMEM footprint of conv/out tile
    vmem_cap = _vmem_capacity_bytes()
    vmem_limit = min(int(vmem_cap * 0.75), 96 * 1024 * 1024)
    budget = min(int(vmem_limit * 0.6), 48 * 1024 * 1024)

    # Resident weight block (counted double-buffered to stay conservative).
    w_bytes = 2 * _round_up(k, 16) * c_lane * 2
    # Per-row working set, pass 1: 2x bf16 patch tile + 2x f32 conv tile (+ stats).
    row_p1 = 2 * k_lane * 2 + 2 * c_lane * 4
    # Per-row working set, pass 2: 2x f32 conv tile + 2x f32 output tile.
    row_p2 = 4 * c_lane * 4
    per_row = max(row_p1, row_p2)
    # TODO(synk): add a K grid axis + f32 VMEM accumulator for extreme layers where
    # the resident weight block alone exceeds this budget (in_c*out_c > ~1024x2048).
    avail = max(budget - w_bytes - (1 << 20), per_row * 8)
    t = max(8, min(4096, (avail // per_row) // 8 * 8))

    # Balanced tiling: waste < 8 rows per tile; force grid >= 2 once M is big enough
    # so both v7x TensorCores get work.
    tiles = max(_cdiv(m8, t), 2 if m8 >= 512 else 1)
    tile_m = _round_up(_cdiv(m8, tiles), 8)
    tiles = _cdiv(m8, tile_m)
    return tile_m, tile_m * tiles, tiles, vmem_limit


def _conv_stats_kernel(p_ref, w_ref, conv_ref, sum_ref, sumsq_ref):
    # Conv tile on the MXU: bf16 x bf16 -> f32 accumulate.
    conv = jnp.dot(p_ref[...], w_ref[...], preferred_element_type=jnp.float32)
    conv_ref[...] = conv                       # stored once in f32, streamed by pass 2
    tm, oc = conv.shape
    c3 = conv.reshape(tm // 8, 8, oc)          # sublane/lane layout preserved
    sum_ref[...] = jnp.sum(c3, axis=0)         # (8, out_c) per-tile partial sums
    sumsq_ref[...] = jnp.sum(c3 * c3, axis=0)


def _norm_kernel(conv_ref, scale_ref, shift_ref, o_ref):
    y = conv_ref[...] * scale_ref[...] + shift_ref[...]   # BN folded into one FMA
    o_ref[...] = jnp.maximum(y, LEAKY_SLOPE * y)           # LeakyReLU(0.2)


def _im2col_nhwc(x_nhwc, ho, wo):
    """(N*Ho*Wo, 9*C) bf16 patch matrix for a 3x3 / stride-2 / pad-1 conv."""
    # TODO(synk): build the 9 taps in-kernel from a haloed (parity-split) NHWC band
    # so the im2col matrix never has to be materialized in HBM.
    n, h, w, c = x_nhwc.shape
    x_pad = jnp.pad(x_nhwc, ((0, 0), (1, 1), (1, 1), (0, 0)))
    cols = []
    for kh in range(3):
        for kw in range(3):
            sl = x_pad[:, kh:kh + 2 * (ho - 1) + 1:2, kw:kw + 2 * (wo - 1) + 1:2, :]
            cols.append(sl)                    # (N, Ho, Wo, C)
    patches = jnp.stack(cols, axis=3)          # (N, Ho, Wo, 9, C), (kh,kw)-major
    return patches.reshape(n * ho * wo, 9 * c)


@jax.jit
def dblock_forward(x_nchw, conv_w, bn_gamma, bn_beta):
    """x_nchw: (N, in_c, H, W); conv_w: (out_c, in_c, 3, 3) (PyTorch layouts)."""
    n, in_c, h, w = x_nchw.shape
    out_c = conv_w.shape[0]
    ho = (h + 2 - 3) // 2 + 1
    wo = (w + 2 - 3) // 2 + 1
    m = n * ho * wo
    k = 9 * in_c
    tile_m, m_pad, grid, vmem_limit = _pick_tiling(m, k, out_c)

    # ---- glue (XLA): NCHW -> NHWC, bf16 im2col at TRUE K, bf16 weight matrix ----
    x_nhwc = jnp.transpose(x_nchw, (0, 2, 3, 1)).astype(jnp.bfloat16)
    patches = _im2col_nhwc(x_nhwc, ho, wo)                       # (m, k) bf16
    patches_p = jnp.pad(patches, ((0, m_pad - m), (0, 0)))       # zero rows only
    w_mat = jnp.transpose(conv_w, (2, 3, 1, 0)).reshape(k, out_c).astype(jnp.bfloat16)

    compiler_params = pltpu.CompilerParams(
        dimension_semantics=("parallel",),        # shard M tiles across TCs on v7x
        vmem_limit_bytes=vmem_limit,
    )

    patch_bytes = m_pad * k * 2
    w_bytes = k * out_c * 2
    conv_bytes = m_pad * out_c * 4
    stat_bytes = 2 * grid * 8 * out_c * 4
    mm_flops = 2 * m_pad * k * out_c

    # ---- pass 1: conv matmul (stored once, f32) + per-channel partial stats -----
    conv_flat, psum, psumsq = pl.pallas_call(
        _conv_stats_kernel,
        grid=(grid,),
        out_shape=(jax.ShapeDtypeStruct((m_pad, out_c), jnp.float32),
                   jax.ShapeDtypeStruct((grid * 8, out_c), jnp.float32),
                   jax.ShapeDtypeStruct((grid * 8, out_c), jnp.float32)),
        in_specs=[
            pl.BlockSpec((tile_m, k), lambda i: (i, 0)),
            pl.BlockSpec((k, out_c), lambda i: (0, 0)),
        ],
        out_specs=(
            pl.BlockSpec((tile_m, out_c), lambda i: (i, 0)),
            pl.BlockSpec((8, out_c), lambda i: (i, 0)),
            pl.BlockSpec((8, out_c), lambda i: (i, 0)),
        ),
        compiler_params=compiler_params,
        cost_estimate=pl.CostEstimate(
            flops=mm_flops, transcendentals=0,
            bytes_accessed=patch_bytes + w_bytes + conv_bytes + stat_bytes),
    )(patches_p, w_mat)

    # ---- glue: fold global BN batch stats into one per-channel scale/shift ------
    # Padded M rows contribute zeros to the sums, so dividing by the *true* m is
    # exact.  Variance uses E[x^2]-E[x]^2 in f32; switch to a shifted two-pass form
    # if activation magnitudes ever blow this past tolerance.
    csum = jnp.sum(psum, axis=0)                      # (out_c,)
    csumsq = jnp.sum(psumsq, axis=0)
    mean = csum / m
    var = jnp.maximum(csumsq / m - mean * mean, 0.0)  # biased var (BN training mode)
    inv_std = lax.rsqrt(var + BN_EPS)
    scale_vec = bn_gamma.astype(jnp.float32) * inv_std
    shift_vec = bn_beta.astype(jnp.float32) - mean * scale_vec
    scale2d = scale_vec.reshape(1, out_c)
    shift2d = shift_vec.reshape(1, out_c)

    # ---- pass 2: stream the stored conv tile, fused scale/shift + LeakyReLU -----
    out_flat = pl.pallas_call(
        _norm_kernel,
        grid=(grid,),
        out_shape=jax.ShapeDtypeStruct((m_pad, out_c), jnp.float32),
        in_specs=[
            pl.BlockSpec((tile_m, out_c), lambda i: (i, 0)),
            pl.BlockSpec((1, out_c), lambda i: (0, 0)),
            pl.BlockSpec((1, out_c), lambda i: (0, 0)),
        ],
        out_specs=pl.BlockSpec((tile_m, out_c), lambda i: (i, 0)),
        compiler_params=compiler_params,
        cost_estimate=pl.CostEstimate(
            flops=3 * m_pad * out_c, transcendentals=0,
            bytes_accessed=2 * conv_bytes),
    )(conv_flat, scale2d, shift2d)

    # (m_pad, out_c) -> true extents -> (N, Ho, Wo, out_c) -> NCHW
    out = out_flat[:m].reshape(n, ho, wo, out_c)
    return jnp.transpose(out, (0, 3, 1, 2))


def _reference(x_nchw, conv_w, bn_gamma, bn_beta):
    """Pure-JAX reference: conv (bf16 operands, f32 accum, matching the MXU path)
    + train-mode BN batch stats + LeakyReLU, all post-conv math in f32."""
    conv = lax.conv_general_dilated(
        x_nchw.astype(jnp.bfloat16), conv_w.astype(jnp.bfloat16),
        window_strides=(2, 2), padding=((1, 1), (1, 1)),
        dimension_numbers=("NCHW", "OIHW", "NCHW"),
        preferred_element_type=jnp.float32)
    mean = jnp.mean(conv, axis=(0, 2, 3), keepdims=True)
    var = jnp.mean((conv - mean) ** 2, axis=(0, 2, 3), keepdims=True)
    y = (conv - mean) * lax.rsqrt(var + BN_EPS)
    y = y * bn_gamma.reshape(1, -1, 1, 1) + bn_beta.reshape(1, -1, 1, 1)
    return jnp.where(y >= 0.0, y, LEAKY_SLOPE * y)


if __name__ == "__main__":
    key = jax.random.PRNGKey(0)
    k_x, k_w, k_g, k_b = jax.random.split(key, 4)

    N, IN_C, OUT_C, H, W = 2, 4, 8, 16, 16
    x = jax.random.normal(k_x, (N, IN_C, H, W), dtype=jnp.float32)
    conv_w = jax.random.normal(k_w, (OUT_C, IN_C, 3, 3), dtype=jnp.float32) * 0.1
    bn_gamma = 1.0 + 0.1 * jax.random.normal(k_g, (OUT_C,), dtype=jnp.float32)
    bn_beta = 0.1 * jax.random.normal(k_b, (OUT_C,), dtype=jnp.float32)

    out = dblock_forward(x, conv_w, bn_gamma, bn_beta)
    out = jax.block_until_ready(out)

    ref = _reference(x, conv_w, bn_gamma, bn_beta)
    assert out.shape == (N, OUT_C, H // 2, W // 2), out.shape
    err = float(jnp.max(jnp.abs(out - ref)))
    assert jnp.allclose(out, ref, atol=5e-3, rtol=5e-3), err

    print("KERNEL_OK")
</pallas_src>

<mosaic_0001>
module attributes {stable_mosaic.version = 11 : i64} {
  func.func @_conv_stats_kernel(%arg0: i32, %arg1: memref<128x36xbf16, #tpu.memory_space<vmem>>, %arg2: memref<36x8xbf16, #tpu.memory_space<vmem>>, %arg3: memref<128x8xf32, #tpu.memory_space<vmem>>, %arg4: memref<8x8xf32, #tpu.memory_space<vmem>>, %arg5: memref<8x8xf32, #tpu.memory_space<vmem>>) attributes {dimension_semantics = [#tpu.dimension_semantics<parallel>], iteration_bounds = array<i64: 1>, scalar_prefetch = 0 : i64, scratch_operands = 0 : i64, tpu.core_type = #tpu.core_type<tc>, window_params = [{transform_indices = @transform_0, window_bounds = array<i64: 128, 36>}, {pipeline_mode = #tpu.pipeline_mode<synchronous>, transform_indices = @transform_1, window_bounds = array<i64: 36, 8>}, {transform_indices = @transform_2, window_bounds = array<i64: 128, 8>}, {transform_indices = @transform_3, window_bounds = array<i64: 8, 8>}, {transform_indices = @transform_4, window_bounds = array<i64: 8, 8>}]} {
    %c0 = arith.constant 0 : index
    %c0_0 = arith.constant 0 : index
    %0 = vector.load %arg1[%c0, %c0_0] : memref<128x36xbf16, #tpu.memory_space<vmem>>, vector<128x36xbf16>
    %c0_1 = arith.constant 0 : index
    %c0_2 = arith.constant 0 : index
    %1 = vector.load %arg2[%c0_1, %c0_2] : memref<36x8xbf16, #tpu.memory_space<vmem>>, vector<36x8xbf16>
    %cst = arith.constant dense<0.000000e+00> : vector<128x8xf32>
    %2 = tpu.matmul %0, %1, %cst {dimension_numbers = #tpu.dot_dimension_numbers<[1], [0], [0], [1], [0, 0, 1, 1], [], []>} : vector<128x36xbf16>, vector<36x8xbf16>, vector<128x8xf32> -> vector<128x8xf32>
    %c0_3 = arith.constant 0 : index
    %c0_4 = arith.constant 0 : index
    %3 = vector.load %arg3[%c0_3, %c0_4] : memref<128x8xf32, #tpu.memory_space<vmem>>, vector<128x8xf32>
    tpu.vector_store %arg3[%c0_3, %c0_4], %2 {strides = array<i32>} : memref<128x8xf32, #tpu.memory_space<vmem>>, vector<128x8xf32>,
    %4 = vector.shape_cast %2 : vector<128x8xf32> to vector<16x8x8xf32>
    %cst_5 = arith.constant dense<0.000000e+00> : vector<8x8xf32>
    %5 = vector.multi_reduction <add>, %4, %cst_5 [0] : vector<16x8x8xf32> to vector<8x8xf32>
    %c0_6 = arith.constant 0 : index
    %c0_7 = arith.constant 0 : index
    %6 = vector.load %arg4[%c0_6, %c0_7] : memref<8x8xf32, #tpu.memory_space<vmem>>, vector<8x8xf32>
    tpu.vector_store %arg4[%c0_6, %c0_7], %5 {strides = array<i32>} : memref<8x8xf32, #tpu.memory_space<vmem>>, vector<8x8xf32>,
    %7 = arith.mulf %4, %4 : vector<16x8x8xf32>
    %cst_8 = arith.constant dense<0.000000e+00> : vector<8x8xf32>
    %8 = vector.multi_reduction <add>, %7, %cst_8 [0] : vector<16x8x8xf32> to vector<8x8xf32>
    %c0_9 = arith.constant 0 : index
    %c0_10 = arith.constant 0 : index
    %9 = vector.load %arg5[%c0_9, %c0_10] : memref<8x8xf32, #tpu.memory_space<vmem>>, vector<8x8xf32>
    tpu.vector_store %arg5[%c0_9, %c0_10], %8 {strides = array<i32>} : memref<8x8xf32, #tpu.memory_space<vmem>>, vector<8x8xf32>,
    return
  }
  func.func @transform_0(%arg0: i32) -> (i32, i32) {
    %c0_i32 = arith.constant 0 : i32
    %c0_i32_0 = arith.constant 0 : i32
    return %arg0, %c0_i32 : i32, i32
  }
  func.func @transform_1(%arg0: i32) -> (i32, i32) {
    %c0_i32 = arith.constant 0 : i32
    %c0_i32_0 = arith.constant 0 : i32
    %c0_i32_1 = arith.constant 0 : i32
    return %c0_i32, %c0_i32_0 : i32, i32
  }
  func.func @transform_2(%arg0: i32) -> (i32, i32) {
    %c0_i32 = arith.constant 0 : i32
    %c0_i32_0 = arith.constant 0 : i32
    return %arg0, %c0_i32 : i32, i32
  }
  func.func @transform_3(%arg0: i32) -> (i32, i32) {
    %c0_i32 = arith.constant 0 : i32
    %c0_i32_0 = arith.constant 0 : i32
    return %arg0, %c0_i32 : i32, i32
  }
  func.func @transform_4(%arg0: i32) -> (i32, i32) {
    %c0_i32 = arith.constant 0 : i32
    %c0_i32_0 = arith.constant 0 : i32
    return %arg0, %c0_i32 : i32, i32
  }
}

module attributes {stable_mosaic.version = 11 : i64} {
  func.func @_norm_kernel(%arg0: i32, %arg1: memref<128x8xf32, #tpu.memory_space<vmem>>, %arg2: memref<1x8xf32, #tpu.memory_space<vmem>>, %arg3: memref<1x8xf32, #tpu.memory_space<vmem>>, %arg4: memref<128x8xf32, #tpu.memory_space<vmem>>) attributes {dimension_semantics = [#tpu.dimension_semantics<parallel>], iteration_bounds = array<i64: 1>, scalar_prefetch = 0 : i64, scratch_operands = 0 : i64, tpu.core_type = #tpu.core_type<tc>, window_params = [{transform_indices = @transform_0, window_bounds = array<i64: 128, 8>}, {pipeline_mode = #tpu.pipeline_mode<synchronous>, transform_indices = @transform_1, window_bounds = array<i64: 1, 8>}, {pipeline_mode = #tpu.pipeline_mode<synchronous>, transform_indices = @transform_2, window_bounds = array<i64: 1, 8>}, {transform_indices = @transform_3, window_bounds = array<i64: 128, 8>}]} {
    %c0 = arith.constant 0 : index
    %c0_0 = arith.constant 0 : index
    %0 = vector.load %arg1[%c0, %c0_0] : memref<128x8xf32, #tpu.memory_space<vmem>>, vector<128x8xf32>
    %c0_1 = arith.constant 0 : index
    %c0_2 = arith.constant 0 : index
    %1 = vector.load %arg2[%c0_1, %c0_2] : memref<1x8xf32, #tpu.memory_space<vmem>>, vector<1x8xf32>
    %2 = vector.broadcast %1 : vector<1x8xf32> to vector<128x8xf32>
    %3 = arith.mulf %0, %2 : vector<128x8xf32>
    %c0_3 = arith.constant 0 : index
    %c0_4 = arith.constant 0 : index
    %4 = vector.load %arg3[%c0_3, %c0_4] : memref<1x8xf32, #tpu.memory_space<vmem>>, vector<1x8xf32>
    %5 = vector.broadcast %4 : vector<1x8xf32> to vector<128x8xf32>
    %6 = arith.addf %3, %5 : vector<128x8xf32>
    %cst = arith.constant 2.000000e-01 : f32
    %7 = vector.broadcast %cst : f32 to vector<128x8xf32>
    %8 = arith.mulf %7, %6 : vector<128x8xf32>
    %9 = arith.maximumf %6, %8 : vector<128x8xf32>
    %c0_5 = arith.constant 0 : index
    %c0_6 = arith.constant 0 : index
    %10 = vector.load %arg4[%c0_5, %c0_6] : memref<128x8xf32, #tpu.memory_space<vmem>>, vector<128x8xf32>
    tpu.vector_store %arg4[%c0_5, %c0_6], %9 {strides = array<i32>} : memref<128x8xf32, #tpu.memory_space<vmem>>, vector<128x8xf32>,
    return
  }
  func.func @transform_0(%arg0: i32) -> (i32, i32) {
    %c0_i32 = arith.constant 0 : i32
    %c0_i32_0 = arith.constant 0 : i32
    return %arg0, %c0_i32 : i32, i32
  }
  func.func @transform_1(%arg0: i32) -> (i32, i32) {
    %c0_i32 = arith.constant 0 : i32
    %c0_i32_0 = arith.constant 0 : i32
    %c0_i32_1 = arith.constant 0 : i32
    return %c0_i32, %c0_i32_0 : i32, i32
  }
  func.func @transform_2(%arg0: i32) -> (i32, i32) {
    %c0_i32 = arith.constant 0 : i32
    %c0_i32_0 = arith.constant 0 : i32
    %c0_i32_1 = arith.constant 0 : i32
    return %c0_i32, %c0_i32_0 : i32, i32
  }
  func.func @transform_3(%arg0: i32) -> (i32, i32) {
    %c0_i32 = arith.constant 0 : i32
    %c0_i32_0 = arith.constant 0 : i32
    return %arg0, %c0_i32 : i32, i32
  }
}

</mosaic_0001>

<bundles_post_ra>
// kernel: dblock_forward.3
= control target key start
LH: loop header
LB: loop body
LE: loop exit
PB: predicated region body
PF: predicated region fallthrough
CT: control target
= control target key end

     0   :  { %vm108_vm0 = vcmask 64512   ;;  %s305_s0 = inlined_call_operand.vmem [shape: f32[128,8], index: 0, kind: input, shape index: {}]   ;;  %s306_s1 = inlined_call_operand.vmem [shape: f32[1,8], index: 1, kind: input, shape index: {}]   ;;  %s307_s2 = inlined_call_operand.vmem [shape: f32[1,8], index: 2, kind: input, shape index: {}]   ;;  %s308_s3 = inlined_call_operand.vmem [shape: f32[128,8], index: 3, kind: output, shape index: {}]  }
   0x1   :  { %v14_v0 = vld [vmem:[%s305_s0] sm:$0xff]  ;;  %v15_v4 = vld [vmem:[%s305_s0 + $0x8] sm:$0xff]  ;;  %v16_v5 = vld [vmem:[%s305_s0 + $0x10] sm:$0xff] }
   0x2   :  { %v157_v1 = vld [vmem:[%s306_s1] ss:$0 sm:$0xff]  ;;  %v17_v6 = vld [vmem:[%s305_s0 + $0x18] sm:$0xff]  ;;  %v19_v11 = vld [vmem:[%s305_s0 + $0x28] sm:$0xff] }
   0x3   :  { %v162_v2 = vld [vmem:[%s307_s2] ss:$0 sm:$0xff]  ;;  %v37_v3 = vmul.f32 %v157_v1, %v14_v0  ;;  %v38_v7 = vmul.f32 %v157_v1, %v15_v4  ;;  %v39_v8 = vmul.f32 %v157_v1, %v16_v5  ;;  %v40_v9 = vmul.f32 %v157_v1, %v17_v6  ;;  %v20_v12 = vld [vmem:[%s305_s0 + $0x30] sm:$0xff]  ;;  %v21_v17 = vld [vmem:[%s305_s0 + $0x38] sm:$0xff] }
   0x4   :  { %v18_v10 = vld [vmem:[%s305_s0 + $0x20] sm:$0xff]  ;;  %v42_v15 = vmul.f32 %v157_v1, %v19_v11  ;;  %v43_v16 = vmul.f32 %v157_v1, %v20_v12  ;;  %v44_v21 = vmul.f32 %v157_v1, %v21_v17  ;;  %v23_v27 = vld [vmem:[%s305_s0 + $0x48] sm:$0xff]  ;;  %v24_v28 = vld [vmem:[%s305_s0 + $0x50] sm:$0xff] }
   0x5   :  { %v60_v13 = vadd.f32 %v162_v2, %v37_v3  ;;  %v41_v14 = vmul.f32 %v157_v1, %v18_v10  ;;  %v61_v18 = vadd.f32 %v162_v2, %v38_v7  ;;  %v62_v19 = vadd.f32 %v162_v2, %v39_v8  ;;  %v22_v22 = vld [vmem:[%s305_s0 + $0x40] sm:$0xff]  ;;  %v25_v29 = vld [vmem:[%s305_s0 + $0x58] sm:$0xff]  ;;  %v27_v43 = vld [vmem:[%s305_s0 + $0x68] sm:$0xff] }
   0x6   :  { %v63_v20 = vadd.f32 %v162_v2, %v40_v9  ;;  %v65_v25 = vadd.f32 %v162_v2, %v42_v15  ;;  %v66_v26 = vadd.f32 %v162_v2, %v43_v16  ;;  %v67_v33 = vadd.f32 %v162_v2, %v44_v21  ;;  %v26_v42 = vld [vmem:[%s305_s0 + $0x60] sm:$0xff]  ;;  %v28_v44 = vld [vmem:[%s305_s0 + $0x70] sm:$0xff]  ;;  %v29_v49 = vld [vmem:[%s305_s0 + $0x78] sm:$0xff] }
   0x7   :  { %v76_v23 = vmul.f32 0.2, %v60_v13  ;;  %v64_v24 = vadd.f32 %v162_v2, %v41_v14  ;;  %v77_v30 = vmul.f32 0.2, %v61_v18  ;;  %v78_v31 = vmul.f32 0.2, %v62_v19 }
   0x8   :  { %v79_v32 = vmul.f32 0.2, %v63_v20  ;;  %v81_v36 = vmul.f32 0.2, %v65_v25  ;;  %v82_v37 = vmul.f32 0.2, %v66_v26  ;;  %v45_v48 = vmul.f32 %v157_v1, %v22_v22 }
   0x9   :  { %v92_v34 = vmax.f32 %v60_v13, %v76_v23  ;;  %v80_v35 = vmul.f32 0.2, %v64_v24  ;;  %v93_v38 = vmax.f32 %v61_v18, %v77_v30  ;;  %v94_v39 = vmax.f32 %v62_v19, %v78_v31 }
   0xa   :  { %v95_v40 = vmax.f32 %v63_v20, %v79_v32  ;;  %v83_v41 = vmul.f32 0.2, %v67_v33  ;;  %v97_v46 = vmax.f32 %v65_v25, %v81_v36  ;;  %v98_v47 = vmax.f32 %v66_v26, %v82_v37 }
   0xb   :  { %109 = vst.msk [vmem:[%s308_s3] sm:$0xff] %vm108_vm0, %v92_v34  ;;  %v96_v45 = vmax.f32 %v64_v24, %v80_v35  ;;  %110 = vst.msk [vmem:[%s308_s3 + $0x8] sm:$0xff] %vm108_vm0, %v93_v38  ;;  %v46_v51 = vmul.f32 %v157_v1, %v23_v27  ;;  %v47_v52 = vmul.f32 %v157_v1, %v24_v28 }
   0xc   :  { %111 = vst.msk [vmem:[%s308_s3 + $0x10] sm:$0xff] %vm108_vm0, %v94_v39  ;;  %112 = vst.msk [vmem:[%s308_s3 + $0x18] sm:$0xff] %vm108_vm0, %v95_v40  ;;  %v99_v50 = vmax.f32 %v67_v33, %v83_v41  ;;  %v48_v53 = vmul.f32 %v157_v1, %v25_v29  ;;  %v68_v54 = vadd.f32 %v162_v2, %v45_v48 }
   0xd   :  { %113 = vst.msk [vmem:[%s308_s3 + $0x20] sm:$0xff] %vm108_vm0, %v96_v45  ;;  %114 = vst.msk [vmem:[%s308_s3 + $0x28] sm:$0xff] %vm108_vm0, %v97_v46  ;;  %v49_v55 = vmul.f32 %v157_v1, %v26_v42  ;;  %v50_v56 = vmul.f32 %v157_v1, %v27_v43  ;;  %v51_v57 = vmul.f32 %v157_v1, %v28_v44 }
   0xe   :  { %115 = vst.msk [vmem:[%s308_s3 + $0x30] sm:$0xff] %vm108_vm0, %v98_v47  ;;  %116 = vst.msk [vmem:[%s308_s3 + $0x38] sm:$0xff] %vm108_vm0, %v99_v50  ;;  %v69_v58 = vadd.f32 %v162_v2, %v46_v51  ;;  %v70_v59 = vadd.f32 %v162_v2, %v47_v52  ;;  %v71_v60 = vadd.f32 %v162_v2, %v48_v53  ;;  %v84_v62 = vmul.f32 0.2, %v68_v54 }
   0xf   :  { %v52_v61 = vmul.f32 %v157_v1, %v29_v49  ;;  %v72_v63 = vadd.f32 %v162_v2, %v49_v55  ;;  %v73_v0 = vadd.f32 %v162_v2, %v50_v56  ;;  %v74_v3 = vadd.f32 %v162_v2, %v51_v57 }
  0x10   :  { %v85_v4 = vmul.f32 0.2, %v69_v58  ;;  %v86_v5 = vmul.f32 0.2, %v70_v59  ;;  %v87_v6 = vmul.f32 0.2, %v71_v60  ;;  %v100_v8 = vmax.f32 %v68_v54, %v84_v62 }
  0x11   :  { %v75_v7 = vadd.f32 %v162_v2, %v52_v61  ;;  %v88_v9 = vmul.f32 0.2, %v72_v63  ;;  %v89_v10 = vmul.f32 0.2, %v73_v0  ;;  %v90_v11 = vmul.f32 0.2, %v74_v3 }
  0x12   :  { %v101_v12 = vmax.f32 %v69_v58, %v85_v4  ;;  %v102_v13 = vmax.f32 %v70_v59, %v86_v5  ;;  %v103_v14 = vmax.f32 %v71_v60, %v87_v6  ;;  %117 = vst.msk [vmem:[%s308_s3 + $0x40] sm:$0xff] %vm108_vm0, %v100_v8 }
  0x13   :  { %v91_v1 = vmul.f32 0.2, %v75_v7  ;;  %v104_v15 = vmax.f32 %v72_v63, %v88_v9  ;;  %v105_v16 = vmax.f32 %v73_v0, %v89_v10  ;;  %v106_v17 = vmax.f32 %v74_v3, %v90_v11 }
  0x14   :  { %118 = vst.msk [vmem:[%s308_s3 + $0x48] sm:$0xff] %vm108_vm0, %v101_v12  ;;  %119 = vst.msk [vmem:[%s308_s3 + $0x50] sm:$0xff] %vm108_vm0, %v102_v13 }
  0x15   :  { %120 = vst.msk [vmem:[%s308_s3 + $0x58] sm:$0xff] %vm108_vm0, %v103_v14  ;;  %v107_v2 = vmax.f32 %v75_v7, %v91_v1  ;;  %121 = vst.msk [vmem:[%s308_s3 + $0x60] sm:$0xff] %vm108_vm0, %v104_v15 }
  0x16   :  { %122 = vst.msk [vmem:[%s308_s3 + $0x68] sm:$0xff] %vm108_vm0, %v105_v16  ;;  %123 = vst.msk [vmem:[%s308_s3 + $0x70] sm:$0xff] %vm108_vm0, %v106_v17 }
  0x17   :  { %124 = vst.msk [vmem:[%s308_s3 + $0x78] sm:$0xff] %vm108_vm0, %v107_v2 }

// kernel: dblock_forward.2
= control target key start
LH: loop header
LB: loop body
LE: loop exit
PB: predicated region body
PF: predicated region fallthrough
CT: control target
= control target key end

     0   :  { %vm91_vm0 = vcmask 293888   ;;  %vm116_vm1 = vcmask 1041408   ;;  %vm217_vm2 = vcmask 64512   ;;  %s585_s1 = inlined_call_operand.vmem [shape: bf16[36,8], index: 1, kind: input, shape index: {}]   ;;  %s586_s0 = inlined_call_operand.vmem [shape: bf16[128,36], index: 0, kind: input, shape index: {}]   ;;  %s587_s2 = inlined_call_operand.vmem [shape: f32[128,8], index: 2, kind: output, shape index: {0}]   ;;  %s588_s3 = inlined_call_operand.vmem [shape: f32[8,8], index: 3, kind: output, shape index: {1}]   ;;  %s589_s4 = inlined_call_operand.vmem [shape: f32[8,8], index: 4, kind: output, shape index: {2}]  }
   0x1   :  { %v386_v0 = vld [vmem:[%s585_s1] sm:$0xff]   ;;  %v387_v1 = vld [vmem:[%s585_s1 + $0x8] sm:$0xff]   ;;  %v388_v2 = vld [vmem:[%s585_s1 + $0x10] ss:$0 sps:$4 sm:$0x33]  }
   0x2   :  { %356 = vmatprep.subr.bf16.mxu0 %v386_v0  ;;  %v389_v3 = vld [vmem:[%s586_s0] sm:$0xff]   ;;  %378 = vmatprep.subr.bf16.mxu1 %v386_v0  ;;  %v118_v5 = vsel %vm116_vm1, %v388_v2, 0  ;;  %v390_v6 = vld [vmem:[%s586_s0 + $0x8] sm:$0xff]   ;;  %v391_v8 = vld [vmem:[%s586_s0 + $0x10] sm:$0xff]  }
   0x3   :  { %357 = vmatpush3.bf16.msra.mxu0 %v386_v0  ;;  %381 = vmatpush3.bf16.msra.mxu1 %v386_v0  ;;  %v393_v4 = vld [vmem:[%s586_s0 + $0x20] sm:$0xff]   ;;  %v394_v7 = vld [vmem:[%s586_s0 + $0x28] sm:$0xff]   ;;  %v395_v9 = vld [vmem:[%s586_s0 + $0x30] sm:$0xff]  }
   0x4   :  { %358 = vmatprep.subr.bf16.mxu0 %v387_v1  ;;  %362 = vmatprep.mubr.msk.bf16.mxu0 %vm91_vm0, %v389_v3  ;;  %v392_v10 = vld [vmem:[%s586_s0 + $0x18] sm:$0xff]  }
   0x5   :  { %379 = vmatprep.subr.bf16.mxu1 %v387_v1  ;;  %370 = vmatprep.mubr.msk.bf16.mxu1 %vm91_vm0, %v393_v4  ;;  %v396_v11 = vld [vmem:[%s586_s0 + $0x38] sm:$0xff]  }
   0x7   :  { %359 = vmatpush3.bf16.msra.mxu0 %v387_v1  ;;  %382 = vmatpush3.bf16.msra.mxu1 %v387_v1 }
   0x8   :  { %384 = vmatprep.subr.msk.bf16.mxu0 %vm116_vm1, %v388_v2  ;;  %385 = vmatprep.subr.msk.bf16.mxu1 %vm116_vm1, %v388_v2 }
   0xb   :  { %361 = vmatpush3.bf16.msra.mxu0 %v118_v5  ;;  %383 = vmatpush3.bf16.msra.mxu1 %v118_v5 }
   0xe   :  { %363 = vmatmul.mubr.msk.bf16.vlgmr.msra.gmra.mrb[0].mxu0 %vm91_vm0, %v390_v6  ;;  %371 = vmatmul.mubr.msk.bf16.vlgmr.msra.gmra.mrb[0].mxu1 %vm91_vm0, %v394_v7 }
   0xf   :  { %366 = vmatprep.mubr.msk.bf16.mxu0 %vm91_vm0, %v391_v8  ;;  %374 = vmatprep.mubr.msk.bf16.mxu1 %vm91_vm0, %v395_v9 }
  0x16   :  { %367 = vmatmul.mubr.msk.bf16.gmra.mrb[4].mxu0 %vm91_vm0, %v392_v10  ;;  %375 = vmatmul.mubr.msk.bf16.gmra.mrb[4].mxu1 %vm91_vm0, %v396_v11 }
  0xe1   :  { %v364_v12 = vpop.f32.mrb[0].mxu0  ;;  %v463_v13 = vpop.f32.mrb[0].mxu1 }
  0xe2   :  { %220 = vst.msk [vmem:[%s587_s2 + $0x10] sm:$0xff] %vm217_vm2, %v364_v12  ;;  %v154_v14 = vpop.f32.mrb[1].mxu0  ;;  %228 = vst.msk [vmem:[%s587_s2 + $0x50] sm:$0xff] %vm217_vm2, %v463_v13  ;;  %v186_v15 = vpop.f32.mrb[1].mxu1  ;;  %v268_v21 = vmul.f32 %v364_v12, %v364_v12  ;;  %v237_v26 = vsel %vm217_vm2, %v364_v12, 0.0  ;;  %v276_v7 = vmul.f32 %v463_v13, %v463_v13  ;;  %v253_v11 = vsel %vm217_vm2, %v463_v13, 0.0 }
  0xe3   :  { %218 = vst.msk [vmem:[%s587_s2] sm:$0xff] %vm217_vm2, %v154_v14  ;;  %v266_v16 = vmul.f32 %v154_v14, %v154_v14  ;;  %v365_v17 = vpop.f32.mrb[2].mxu0  ;;  %226 = vst.msk [vmem:[%s587_s2 + $0x40] sm:$0xff] %vm217_vm2, %v186_v15  ;;  %v482_v18 = vpop.f32.mrb[2].mxu1  ;;  %v234_v22 = vsel %vm217_vm2, %v154_v14, 0.0  ;;  %v274_v58 = vmul.f32 %v186_v15, %v186_v15  ;;  %v249_v63 = vsel %vm217_vm2, %v186_v15, 0.0 }
  0xe4   :  { %221 = vst.msk [vmem:[%s587_s2 + $0x18] sm:$0xff] %vm217_vm2, %v365_v17  ;;  %v157_v19 = vpop.f32.mrb[3].mxu0  ;;  %229 = vst.msk [vmem:[%s587_s2 + $0x58] sm:$0xff] %vm217_vm2, %v482_v18  ;;  %v189_v20 = vpop.f32.mrb[3].mxu1  ;;  %v269_v28 = vmul.f32 %v365_v17, %v365_v17  ;;  %v285_v32 = vsel %vm217_vm2, %v268_v21, 0.0  ;;  %v239_v33 = vsel %vm217_vm2, %v365_v17, 0.0  ;;  %v277_v12 = vmul.f32 %v482_v18, %v482_v18 }
  0xe5   :  { %219 = vst.msk [vmem:[%s587_s2 + $0x8] sm:$0xff] %vm217_vm2, %v157_v19  ;;  %v235_v23 = vsel %vm217_vm2, %v157_v19, 0.0  ;;  %v267_v24 = vmul.f32 %v157_v19, %v157_v19  ;;  %227 = vst.msk [vmem:[%s587_s2 + $0x48] sm:$0xff] %vm217_vm2, %v189_v20  ;;  %v282_v27 = vsel %vm217_vm2, %v266_v16, 0.0  ;;  %v297_v3 = vsel %vm217_vm2, %v274_v58, 0.0 }
  0xe6   :  { %v236_v25 = vadd.f32 %v235_v23, %v234_v22  ;;  %v287_v40 = vsel %vm217_vm2, %v269_v28, 0.0  ;;  %v275_v4 = vmul.f32 %v189_v20, %v189_v20  ;;  %v251_v8 = vsel %vm217_vm2, %v189_v20, 0.0 }
  0xe7   :  { %v283_v29 = vsel %vm217_vm2, %v267_v24, 0.0  ;;  %v301_v19 = vsel %vm217_vm2, %v276_v7, 0.0  ;;  %v255_v21 = vsel %vm217_vm2, %v482_v18, 0.0  ;;  %v303_v24 = vsel %vm217_vm2, %v277_v12, 0.0 }
  0xe8   :  { %v238_v30 = vadd.f32 %v237_v26, %v236_v25  ;;  %v284_v31 = vadd.f32 %v283_v29, %v282_v27  ;;  %v299_v14 = vsel %vm217_vm2, %v275_v4, 0.0 }
  0xe9   :  { %v368_v34 = vpop.f32.mrb[4].mxu0  ;;  %v508_v35 = vpop.f32.mrb[4].mxu1 }
  0xea   :  { %v286_v36 = vadd.f32 %v285_v32, %v284_v31  ;;  %224 = vst.msk [vmem:[%s587_s2 + $0x30] sm:$0xff] %vm217_vm2, %v368_v34  ;;  %v170_v37 = vpop.f32.mrb[5].mxu0  ;;  %v240_v38 = vadd.f32 %v239_v33, %v238_v30  ;;  %232 = vst.msk [vmem:[%s587_s2 + $0x70] sm:$0xff] %vm217_vm2, %v508_v35  ;;  %v202_v39 = vpop.f32.mrb[5].mxu1  ;;  %v272_v49 = vmul.f32 %v368_v34, %v368_v34  ;;  %v245_v55 = vsel %vm217_vm2, %v368_v34, 0.0 }
  0xeb   :  { %222 = vst.msk [vmem:[%s587_s2 + $0x20] sm:$0xff] %vm217_vm2, %v170_v37  ;;  %v241_v41 = vsel %vm217_vm2, %v170_v37, 0.0  ;;  %v270_v42 = vmul.f32 %v170_v37, %v170_v37  ;;  %v369_v43 = vpop.f32.mrb[6].mxu0  ;;  %230 = vst.msk [vmem:[%s587_s2 + $0x60] sm:$0xff] %vm217_vm2, %v202_v39  ;;  %v377_v44 = vpop.f32.mrb[6].mxu1  ;;  %v278_v15 = vmul.f32 %v202_v39, %v202_v39  ;;  %v257_v20 = vsel %vm217_vm2, %v202_v39, 0.0 }
  0xec   :  { %v242_v45 = vadd.f32 %v241_v41, %v240_v38  ;;  %v288_v46 = vadd.f32 %v287_v40, %v286_v36  ;;  %225 = vst.msk [vmem:[%s587_s2 + $0x38] sm:$0xff] %vm217_vm2, %v369_v43  ;;  %v173_v47 = vpop.f32.mrb[7].mxu0  ;;  %233 = vst.msk [vmem:[%s587_s2 + $0x78] sm:$0xff] %vm217_vm2, %v377_v44  ;;  %v205_v48 = vpop.f32.mrb[7].mxu1  ;;  %v273_v56 = vmul.f32 %v369_v43, %v369_v43  ;;  %v293_v61 = vsel %vm217_vm2, %v272_v49, 0.0 }
  0xed   :  { %v289_v50 = vsel %vm217_vm2, %v270_v42, 0.0  ;;  %223 = vst.msk [vmem:[%s587_s2 + $0x28] sm:$0xff] %vm217_vm2, %v173_v47  ;;  %v243_v51 = vsel %vm217_vm2, %v173_v47, 0.0  ;;  %v271_v52 = vmul.f32 %v173_v47, %v173_v47  ;;  %231 = vst.msk [vmem:[%s587_s2 + $0x68] sm:$0xff] %vm217_vm2, %v205_v48  ;;  %v247_v62 = vsel %vm217_vm2, %v369_v43, 0.0 }
  0xee   :  { %v290_v53 = vadd.f32 %v289_v50, %v288_v46  ;;  %v244_v54 = vadd.f32 %v243_v51, %v242_v45  ;;  %v295_v2 = vsel %vm217_vm2, %v273_v56, 0.0  ;;  %v305_v13 = vsel %vm217_vm2, %v278_v15, 0.0 }
  0xef   :  { %v291_v57 = vsel %vm217_vm2, %v271_v52, 0.0  ;;  %v279_v25 = vmul.f32 %v205_v48, %v205_v48  ;;  %v280_v28 = vmul.f32 %v508_v35, %v508_v35  ;;  %v259_v29 = vsel %vm217_vm2, %v205_v48, 0.0 }
  0xf0   :  { %v246_v59 = vadd.f32 %v245_v55, %v244_v54  ;;  %v292_v60 = vadd.f32 %v291_v57, %v290_v53  ;;  %v261_v18 = vsel %vm217_vm2, %v508_v35, 0.0  ;;  %v281_v32 = vmul.f32 %v377_v44, %v377_v44 }
  0xf1   :  { %v307_v33 = vsel %vm217_vm2, %v279_v25, 0.0  ;;  %v309_v37 = vsel %vm217_vm2, %v280_v28, 0.0  ;;  %v263_v38 = vsel %vm217_vm2, %v377_v44, 0.0 }
  0xf2   :  { %v294_v0 = vadd.f32 %v293_v61, %v292_v60  ;;  %v248_v1 = vadd.f32 %v247_v62, %v246_v59  ;;  %v311_v41 = vsel %vm217_vm2, %v281_v32, 0.0 }
  0xf4   :  { %v250_v5 = vadd.f32 %v249_v63, %v248_v1  ;;  %v296_v6 = vadd.f32 %v295_v2, %v294_v0 }
  0xf6   :  { %v298_v9 = vadd.f32 %v297_v3, %v296_v6  ;;  %v252_v10 = vadd.f32 %v251_v8, %v250_v5 }
  0xf8   :  { %v254_v16 = vadd.f32 %v253_v11, %v252_v10  ;;  %v300_v17 = vadd.f32 %v299_v14, %v298_v9 }
  0xfa   :  { %v302_v22 = vadd.f32 %v301_v19, %v300_v17  ;;  %v256_v23 = vadd.f32 %v255_v21, %v254_v16 }
  0xfc   :  { %v258_v26 = vadd.f32 %v257_v20, %v256_v23  ;;  %v304_v27 = vadd.f32 %v303_v24, %v302_v22 }
  0xfe   :  { %v306_v30 = vadd.f32 %v305_v13, %v304_v27  ;;  %v260_v31 = vadd.f32 %v259_v29, %v258_v26 }
 0x100   :  { %v262_v34 = vadd.f32 %v261_v18, %v260_v31  ;;  %v308_v36 = vadd.f32 %v307_v33, %v306_v30 }
 0x102   :  { %v264_v39 = vadd.f32 %v263_v38, %v262_v34  ;;  %v310_v40 = vadd.f32 %v309_v37, %v308_v36 }
 0x104   :  { %265 = vst.msk [vmem:[%s588_s3] sm:$0xff] %vm217_vm2, %v264_v39  ;;  %v312_v42 = vadd.f32 %v311_v41, %v310_v40 }
 0x106   :  { %313 = vst.msk [vmem:[%s589_s4] sm:$0xff] %vm217_vm2, %v312_v42 }

</bundles_post_ra>
